<compile_context>
chip_gen: v5e
topology: v5e:2x2
jax: 0.10.0
libtpu: 0.0.40
codegen_flags: <defaults>
</compile_context>

<pallas_src>
import functools

import jax
import jax.numpy as jnp
from jax.experimental import pallas as pl
from jax.experimental.pallas import tpu as pltpu


def _round_up(x, m):
    return ((x + m - 1) // m) * m


def _pick_tile(dim, candidates=(512, 256, 128)):
    # `dim` is always a multiple of 128 here.
    for t in candidates:
        if dim % t == 0:
            return t
    return 128


# --------------------------------------------------------------------------- #
# Parameter preparation (call ONCE per parameter set and cache the result).
# --------------------------------------------------------------------------- #
def prepare_params(weight, bias, *, compute_dtype=jnp.bfloat16):
    """Transpose + zero-pad the nn.Linear parameters once.

    weight : (out_channels, K)   torch nn.Linear layout
    bias   : (out_channels,)
    returns (w_p, b_p) = ((Kp, Np) compute_dtype, (1, Np) float32)
    """
    out_channels, K = weight.shape
    Kp = _round_up(K, 128)
    Np = _round_up(out_channels, 128)
    w_p = jnp.zeros((Kp, Np), compute_dtype).at[:K, :out_channels].set(
        jnp.transpose(weight).astype(compute_dtype))
    b_p = jnp.zeros((1, Np), jnp.float32).at[:, :out_channels].set(
        bias.astype(jnp.float32).reshape(1, out_channels))
    return w_p, b_p


# --------------------------------------------------------------------------- #
# Kernels
# --------------------------------------------------------------------------- #
def _single_block_kernel(k_valid, out_cols, compute_dtype,
                         x_ref, w_ref, b_ref, o_ref):
    """Whole problem in one MXU pass -- no grid, no scratch, no pl.when."""
    w = w_ref[...]
    if k_valid != w.shape[0]:          # static: drop zero-padded K rows
        w = w[:k_valid, :]
    acc = jnp.dot(x_ref[...].astype(compute_dtype), w,
                  preferred_element_type=jnp.float32)
    acc = acc + b_ref[...]
    o_ref[...] = acc[:, :out_cols].astype(o_ref.dtype)


def _tiled_linear_kernel(k_axis, k_valid, tk, mask_k_tail, compute_dtype,
                         x_ref, w_ref, b_ref, o_ref, acc_ref):
    """One output tile; K is the last ('arbitrary') grid axis."""
    k = pl.program_id(k_axis)

    @pl.when(k == 0)
    def _init():
        acc_ref[...] = jnp.zeros_like(acc_ref)

    a = x_ref[...]
    if mask_k_tail:
        # Activations are NOT host-padded along K; zero the out-of-range tail
        # so the partially-loaded last K block contributes nothing.
        col = k * tk + jax.lax.broadcasted_iota(jnp.int32, a.shape, 1)
        a = jnp.where(col < k_valid, a, jnp.zeros_like(a))

    acc_ref[...] += jnp.dot(a.astype(compute_dtype), w_ref[...],
                            preferred_element_type=jnp.float32)

    @pl.when(k == pl.num_programs(k_axis) - 1)
    def _finalize():
        o_ref[...] = (acc_ref[...] + b_ref[...]).astype(o_ref.dtype)


def _weight_block_spec(shape, index_map, n_buffers):
    if n_buffers > 2:
        try:
            return pl.BlockSpec(shape, index_map,
                                pipeline_mode=pl.Buffered(n_buffers))
        except (TypeError, AttributeError):
            pass  # older jax: fall back to default double-buffering
    return pl.BlockSpec(shape, index_map)


# --------------------------------------------------------------------------- #
# Forward pass
# --------------------------------------------------------------------------- #
def multi_source_projection_1d(x, w_p, b_p, out_channels, *,
                               compute_dtype=jnp.bfloat16):
    """Forward pass.  w_p / b_p must come from prepare_params (call it once)."""
    B = x.shape[0]
    K = 1
    for d in x.shape[1:]:
        K *= d
    x2 = x.reshape(B, K)                       # flatten only: no cast, no pad
    Kp, Np = w_p.shape
    assert K <= Kp < K + 128 and out_channels <= Np < out_channels + 128
    out_dtype = x2.dtype
    out_shape = jax.ShapeDtypeStruct((B, out_channels), out_dtype)

    # ---- tiny problems: single MXU pass, no grid / scratch / pl.when --------
    if B <= 512 and Kp <= 1024 and Np <= 1024:
        kern = functools.partial(_single_block_kernel, K, out_channels,
                                 compute_dtype)
        return pl.pallas_call(kern, out_shape=out_shape)(x2, w_p, b_p)

    # ---- tiled paths ---------------------------------------------------------
    tk = _pick_tile(Kp)
    tn = _pick_tile(Np)
    mask_k_tail = (K != Kp)
    x_bytes = x2.dtype.itemsize
    w_bytes = w_p.dtype.itemsize
    o_bytes = jnp.dtype(out_dtype).itemsize

    if B <= 256:
        # Small batch: weight-bandwidth bound.  No M grid axis; whole (B, tk)
        # activation slab resident per K step; triple-buffered weight stream.
        while Np // tn < 2 and tn > 128:       # >= 2 blocks on the parallel axis
            tn //= 2
        gn, gk = Np // tn, Kp // tk
        kern = functools.partial(_tiled_linear_kernel, 1, K, tk, mask_k_tail,
                                 compute_dtype)
        in_specs = [
            pl.BlockSpec((B, tk), lambda j, k: (0, k)),            # activations
            _weight_block_spec((tk, tn), lambda j, k: (k, j), 3),  # weight
            pl.BlockSpec((1, tn), lambda j, k: (0, j)),            # bias
        ]
        out_specs = pl.BlockSpec((B, tn), lambda j, k: (0, j))
        scratch = [pltpu.VMEM((B, tn), jnp.float32)]
        grid = (gn, gk)
        semantics = ("parallel", "arbitrary")
        footprint = (2 * B * tk * x_bytes + 3 * tk * tn * w_bytes
                     + 2 * tn * 4 + 2 * B * tn * o_bytes + B * tn * 4)
    else:
        # Large batch: classic (M, N, K) tiling, compute-bound on the MXU.
        tm = 256
        gm, gn, gk = pl.cdiv(B, tm), Np // tn, Kp // tk
        kern = functools.partial(_tiled_linear_kernel, 2, K, tk, mask_k_tail,
                                 compute_dtype)
        in_specs = [
            pl.BlockSpec((tm, tk), lambda i, j, k: (i, k)),
            pl.BlockSpec((tk, tn), lambda i, j, k: (k, j)),
            pl.BlockSpec((1, tn), lambda i, j, k: (0, j)),
        ]
        out_specs = pl.BlockSpec((tm, tn), lambda i, j, k: (i, j))
        scratch = [pltpu.VMEM((tm, tn), jnp.float32)]
        grid = (gm, gn, gk)
        semantics = ("parallel", "parallel", "arbitrary")
        footprint = (2 * tm * tk * x_bytes + 2 * tk * tn * w_bytes
                     + 2 * tn * 4 + 2 * tm * tn * o_bytes + tm * tn * 4)

    vmem_limit = int(min(48 * 1024 * 1024, footprint + 16 * 1024 * 1024))

    return pl.pallas_call(
        kern,
        out_shape=out_shape,
        grid_spec=pltpu.PrefetchScalarGridSpec(
            num_scalar_prefetch=0,
            grid=grid,
            in_specs=in_specs,
            out_specs=out_specs,
            scratch_shapes=scratch,
        ),
        compiler_params=pltpu.CompilerParams(
            dimension_semantics=semantics,
            vmem_limit_bytes=vmem_limit,
        ),
    )(x2, w_p, b_p)


class MultiSourceProjection1d:
    """Pallas TPU equivalent of the torch module (channel_last=True only)."""

    def __init__(self, weight, bias, *, compute_dtype=jnp.bfloat16):
        self.out_channels = weight.shape[0]
        self.compute_dtype = compute_dtype
        # Hoisted: transpose + pad the parameters once, reuse every call.
        self.w_p, self.b_p = prepare_params(weight, bias,
                                            compute_dtype=compute_dtype)

    def __call__(self, x):
        return multi_source_projection_1d(x, self.w_p, self.b_p,
                                          self.out_channels,
                                          compute_dtype=self.compute_dtype)


# --------------------------------------------------------------------------- #
# Self-test
# --------------------------------------------------------------------------- #
def _reference(x, weight, bias):
    B = x.shape[0]
    return (x.reshape(B, -1).astype(jnp.float32)
            @ weight.astype(jnp.float32).T + bias.astype(jnp.float32))


if __name__ == "__main__":
    key = jax.random.PRNGKey(0)

    def run_case(case_key, B, n_sources, in_channels, out_channels):
        K = n_sources * in_channels
        kx, kw, kb = jax.random.split(case_key, 3)
        x = jax.random.normal(kx, (B, n_sources, in_channels), dtype=jnp.float32)
        bound = 1.0 / (K ** 0.5)
        weight = jax.random.uniform(kw, (out_channels, K), jnp.float32,
                                    -bound, bound)
        bias = jax.random.uniform(kb, (out_channels,), jnp.float32,
                                  -bound, bound)

        model = MultiSourceProjection1d(weight, bias)   # params prepared once
        out = jax.block_until_ready(model(x))
        ref = jax.block_until_ready(_reference(x, weight, bias))

        if out.shape != (B, out_channels):
            raise AssertionError(f"bad output shape: {out.shape}")
        err = float(jnp.max(jnp.abs(out.astype(jnp.float32) - ref)))
        scale = max(1.0, float(jnp.max(jnp.abs(ref))))
        # bf16 operands (f32 accumulation) -> loosened tolerance vs f32 ref.
        if err > 2e-2 * scale:
            raise AssertionError(f"mismatch: max abs err = {err} (scale {scale})")

    k1, k2 = jax.random.split(key)
    # Small shapes consistent with the module: batch=2, n_sources=4, in_ch=32.
    run_case(k1, B=2, n_sources=4, in_channels=32, out_channels=64)    # fast single-block path
    # Slightly larger: exercises the tiled (N, K) grid, K-tail mask, N edge.
    run_case(k2, B=10, n_sources=4, in_channels=370, out_channels=200)

    print("KERNEL_OK")
</pallas_src>

<mosaic_0001>
module attributes {stable_mosaic.version = 11 : i64} {
  func.func @_single_block_kernel(%arg0: memref<2x128xf32, #tpu.memory_space<vmem>>, %arg1: memref<128x128xbf16, #tpu.memory_space<vmem>>, %arg2: memref<1x128xf32, #tpu.memory_space<vmem>>, %arg3: memref<2x64xf32, #tpu.memory_space<vmem>>) attributes {dimension_semantics = [], scalar_prefetch = 0 : i64, scratch_operands = 0 : i64, tpu.core_type = #tpu.core_type<tc>} {
    %c0 = arith.constant 0 : index
    %c0_0 = arith.constant 0 : index
    %0 = vector.load %arg1[%c0, %c0_0] : memref<128x128xbf16, #tpu.memory_space<vmem>>, vector<128x128xbf16>
    %c0_1 = arith.constant 0 : index
    %c0_2 = arith.constant 0 : index
    %1 = vector.load %arg0[%c0_1, %c0_2] : memref<2x128xf32, #tpu.memory_space<vmem>>, vector<2x128xf32>
    %2 = arith.truncf %1 : vector<2x128xf32> to vector<2x128xbf16>
    %cst = arith.constant dense<0.000000e+00> : vector<2x128xf32>
    %3 = tpu.matmul %2, %0, %cst {dimension_numbers = #tpu.dot_dimension_numbers<[1], [0], [0], [1], [0, 0, 1, 1], [], []>} : vector<2x128xbf16>, vector<128x128xbf16>, vector<2x128xf32> -> vector<2x128xf32>
    %c0_3 = arith.constant 0 : index
    %c0_4 = arith.constant 0 : index
    %4 = vector.load %arg2[%c0_3, %c0_4] : memref<1x128xf32, #tpu.memory_space<vmem>>, vector<1x128xf32>
    %5 = vector.broadcast %4 : vector<1x128xf32> to vector<2x128xf32>
    %6 = arith.addf %3, %5 : vector<2x128xf32>
    %7 = vector.extract_strided_slice %6 {offsets = [0, 0], sizes = [2, 64], strides = [1, 1]} : vector<2x128xf32> to vector<2x64xf32>
    %c0_5 = arith.constant 0 : index
    %c0_6 = arith.constant 0 : index
    %8 = vector.load %arg3[%c0_5, %c0_6] : memref<2x64xf32, #tpu.memory_space<vmem>>, vector<2x64xf32>
    tpu.vector_store %arg3[%c0_5, %c0_6], %7 {strides = array<i32>} : memref<2x64xf32, #tpu.memory_space<vmem>>, vector<2x64xf32>,
    return
  }
}

</mosaic_0001>

<bundles_post_ra>
// kernel: tpu_custom_call.1
= control target key start
LH: loop header
LB: loop body
LE: loop exit
PB: predicated region body
PF: predicated region fallthrough
CT: control target
= control target key end

     0   :  { %8 = vsyncpa [#allocation3], 0  ;;  %s309_s0 = inlined_call_operand.hbm [shape: f32[2,128], index: 0, kind: input, shape index: {}]   ;;  %s310_s1 = inlined_call_operand.hbm [shape: bf16[128,128], index: 1, kind: input, shape index: {}]   ;;  %s311_s2 = inlined_call_operand.vmem [shape: f32[1,128], index: 2, kind: input, shape index: {}]   ;;  %s312_s3 = inlined_call_operand.hbm [shape: f32[2,64], index: 3, kind: output, shape index: {}]  }
   0x1   :  { %9 = vsyncpa [#allocation6], 0 }
   0x2   :  { %10 = vsyncpa [#allocation4], 0  ;;  %s16_s14 = sshll.u32 %s309_s0, 4  ;;  %s272_s15 = smov [#allocation2]   ;;  %s17_s14 = int_to_ptr.hbm [resolvable:$true] %s16_s14 }
   0x3   :  { %s18_s16 = sshll.u32 %s272_s15, 4  ;;  %s26_s19 = sshll.u32 %s310_s1, 4  ;;  %s19_s16 = int_to_ptr.vmem [resolvable:$true] %s18_s16  ;;  %s27_s19 = int_to_ptr.hbm [resolvable:$true] %s26_s19 }
   0x4   :  { %21 = dma.hbm_to_vmem [thread:$0]  %s17_s14, 32, %s19_s16, [#allocation3]  }
   0x5   :  { %s273_s20 = smov [#allocation5]   ;;  %s274_s22 = smov 64  }
   0x6   :  { %s28_s21 = sshll.u32 %s273_s20, 4  ;;  %s275_s23 = smov 4   ;;  %s29_s21 = int_to_ptr.vmem [resolvable:$true] %s28_s21 }
   0x7   :  { %34 = dma.hbm_to_vmem [thread:$0]  %s27_s19, 1024, %s29_s21, [#allocation6], %s274_s22, %s274_s22, %s275_s23  }
   0x8   :  { %266 = dma.done.wait [#allocation3], 32  }
   0x9   :  { %267 = vsyncadd [#allocation3], 4294967264 }
   0xa   :  { %268 = dma.done.wait [#allocation6], 1024  }
   0xb   :  { %269 = vsyncadd [#allocation6], 4294966272  ;;  %v187_v0 = vld [vmem:[#allocation5 + $0x38] sm:$0xff]  ;;  %v186_v1 = vld [vmem:[#allocation5 + $0x30] sm:$0xff]  ;;  %s276_s24 = smov [#allocation7]   ;;  %s137_s28 = sshll.u32 %s312_s3, 4  ;;  %s138_s28 = int_to_ptr.hbm [resolvable:$true] %s137_s28 }
   0xc   :  { %115 = vmatpush.bf16.msra.mxu0 %v187_v0  ;;  %v185_v2 = vld [vmem:[#allocation5 + $0x28] sm:$0xff]  ;;  %v184_v3 = vld [vmem:[#allocation5 + $0x20] sm:$0xff]  ;;  %v183_v4 = vld [vmem:[#allocation5 + $0x18] sm:$0xff]  ;;  %s135_s25 = sshll.u32 %s276_s24, 4  ;;  %vm128_vm0 = vcmask 517120   ;;  %s136_s25 = int_to_ptr.vmem [resolvable:$true] %s135_s25 }
   0xd   :  { %v182_v5 = vld [vmem:[#allocation5 + $0x10] sm:$0xff]  ;;  %v181_v6 = vld [vmem:[#allocation5 + $0x8] sm:$0xff]  ;;  %v180_v7 = vld [vmem:[#allocation5] sm:$0xff] }
   0xe   :  { %v61_v8 = vld [vmem:[#allocation2] sm:$0x3] }
   0xf   :  { %v62_v9 = vpack.c.bf16 %v61_v8, %v61_v8  ;;  %v193_v10 = vld [vmem:[%s311_s2] ss:$0 sm:$0xff] }
  0x10   :  { %116 = vmatpush.bf16.msra.mxu0 %v186_v1 }
  0x14   :  { %117 = vmatpush.bf16.msra.mxu0 %v185_v2 }
  0x18   :  { %118 = vmatpush.bf16.msra.mxu0 %v184_v3 }
  0x1c   :  { %119 = vmatpush.bf16.msra.mxu0 %v183_v4 }
  0x20   :  { %120 = vmatpush.bf16.msra.mxu0 %v182_v5 }
  0x24   :  { %121 = vmatpush.bf16.msra.mxu0 %v181_v6 }
  0x28   :  { %122 = vmatpush.bf16.msra.mxu0 %v180_v7 }
  0x2b   :  { %123 = vmatmul.bf16.vlgmr.msra.gmra.mxu0 %v62_v9 }
  0xa8   :  { %v124_v11 = vpop.f32.mrf.mxu0 }
  0xa9   :  { %v125_v12 = vadd.f32 %v193_v10, %v124_v11 }
  0xab   :  { %129 = vst.msk [vmem:[#allocation7] sm:$0x3] %vm128_vm0, %v125_v12 }
  0xac   :  { %140 = dma.vmem_to_hbm [thread:$0]  %s136_s25, 32, %s138_s28, [#allocation4]  }
  0xb0   :  { %v126_v13 = vpop.f32.mrf.mxu0 }
  0xb1   :  { %270 = dma.done.wait [#allocation4], 32  }
  0xb2   :  { %271 = vsyncadd [#allocation4], 4294967264 }
  0xb3   :  { %145 = vsyncpa [#allocation3], 1 }
  0xb4   :  { %146 = vsyncpa [#allocation6], 1 }
  0xb5   :  { %147 = vsyncpa [#allocation4], 1 }

</bundles_post_ra>
